<compile_context>
chip_gen: v7x
topology: tpu7x:2x2x1
jax: 0.10.0
libtpu: 0.0.40
codegen_flags: <defaults>
</compile_context>

<pallas_src>
import jax
import jax.numpy as jnp
from jax.experimental import pallas as pl
from jax.experimental.pallas import tpu as pltpu


def _sucre_kernel(params_ref, cp_ref, jg_ref, out_ref):
    # params_ref: SMEM (9,) f32  ->  [B0,B1,B2, beta0,beta1,beta2, gamma0,gamma1,gamma2]
    # cp_ref, jg_ref, out_ref: VMEM (3, BM, 128) tiles (dense 8x128 vregs)
    c0 = cp_ref[0]
    c1 = cp_ref[1]
    c2 = cp_ref[2]
    # channel norm as plain VPU adds on dense (BM, 128) slabs (no cross-sublane reduce)
    z = jnp.sqrt(c0 * c0 + c1 * c1 + c2 * c2)                  # (BM, 128)

    for c in range(3):
        B_c = params_ref[c]
        beta_c = params_ref[3 + c]
        gamma_c = params_ref[6 + c]
        absorption = jnp.exp(-beta_c * z)                      # (BM, 128)
        backscatter = B_c * (1.0 - jnp.exp(-gamma_c * z))      # (BM, 128)
        # l == 1.0 for light_model=False
        out_ref[c] = jg_ref[c] * absorption + backscatter


def sucre_forward(J, u, v, cP, B, beta, gamma, *, tm=512):
    """J: (H, W, 3) float32; u, v: (N,) int32; cP: (3, N) float32.
    B, beta, gamma: (3, 1) float32. Returns I_hat: (3, N) float32."""
    N = cP.shape[1]

    # glue: channel-first image (tiny H*W*3 transpose), then gather -> already (3, N);
    # avoids transposing the large (N, 3) gather result.
    Jc = jnp.transpose(J, (2, 0, 1)).astype(jnp.float32)       # (3, H, W)
    Jg = Jc[:, v, u]                                           # (3, N)

    cP = cP.astype(jnp.float32)

    # dense (3, rows, 128) layout; pad N so rows is a multiple of the block rows.
    rows = -(-N // 128)
    bm = max(8, min(tm, ((rows + 7) // 8) * 8))                # block rows, multiple of 8
    rows_p = ((rows + bm - 1) // bm) * bm
    Np = rows_p * 128
    if Np != N:
        cP = jnp.pad(cP, ((0, 0), (0, Np - N)))
        Jg = jnp.pad(Jg, ((0, 0), (0, Np - N)))
    cP3 = cP.reshape(3, rows_p, 128)
    Jg3 = Jg.reshape(3, rows_p, 128)

    # 9 scalars -> SMEM: [B(3), beta(3), gamma(3)]
    params = jnp.concatenate(
        [B.reshape(-1), beta.reshape(-1), gamma.reshape(-1)]).astype(jnp.float32)

    grid = (rows_p // bm,)
    out3 = pl.pallas_call(
        _sucre_kernel,
        out_shape=jax.ShapeDtypeStruct((3, rows_p, 128), jnp.float32),
        grid_spec=pltpu.PrefetchScalarGridSpec(
            num_scalar_prefetch=0,
            grid=grid,
            in_specs=[
                pl.BlockSpec(memory_space=pltpu.MemorySpace.SMEM),  # params (whole, SMEM)
                pl.BlockSpec((3, bm, 128), lambda i: (0, i, 0)),    # cP tile
                pl.BlockSpec((3, bm, 128), lambda i: (0, i, 0)),    # gathered-J tile
            ],
            out_specs=pl.BlockSpec((3, bm, 128), lambda i: (0, i, 0)),
        ),
        compiler_params=pltpu.CompilerParams(
            dimension_semantics=("parallel",)),
        cost_estimate=pl.CostEstimate(
            flops=10 * Np, transcendentals=7 * Np, bytes_accessed=36 * Np),
    )(params, cP3, Jg3)

    return out3.reshape(3, Np)[:, :N]


def sucre_forward_ref(J, u, v, cP, B, beta, gamma):
    z = jnp.linalg.norm(cP, axis=0)                            # (N,)
    Jg = J[v, u].T                                             # (3, N)
    return Jg * jnp.exp(-beta * z) + B * (1.0 - jnp.exp(-gamma * z))


if __name__ == "__main__":
    key = jax.random.PRNGKey(0)
    H, W, N = 16, 16, 1000                                     # N not a multiple of 128 on purpose

    kJ, ku, kv, kP = jax.random.split(key, 4)
    J = jax.random.uniform(kJ, (H, W, 3), dtype=jnp.float32)   # "image" parameter
    u = jax.random.randint(ku, (N,), 0, W, dtype=jnp.int32)
    v = jax.random.randint(kv, (N,), 0, H, dtype=jnp.int32)
    cP = jax.random.uniform(kP, (3, N), dtype=jnp.float32, minval=0.5, maxval=5.0)

    # deterministic parameter init, matching __init__
    B = jnp.full((3, 1), 0.1, dtype=jnp.float32)
    beta = jnp.full((3, 1), 0.1, dtype=jnp.float32)
    gamma = jnp.full((3, 1), 0.1, dtype=jnp.float32)

    # TODO(synk): light_model=True branch (se3.exp pose + Mahalanobis vignetting) not implemented.

    out = sucre_forward(J, u, v, cP, B, beta, gamma)
    out = jax.block_until_ready(out)

    ref = sucre_forward_ref(J, u, v, cP, B, beta, gamma)
    assert out.shape == (3, N)
    assert jnp.allclose(out, ref, atol=1e-5, rtol=1e-5)

    print("KERNEL_OK")
</pallas_src>

<mosaic_0001>
module attributes {stable_mosaic.version = 11 : i64} {
  func.func @_sucre_kernel(%arg0: i32, %arg1: memref<9xf32, #tpu.memory_space<smem>>, %arg2: memref<3x8x128xf32, #tpu.memory_space<vmem>>, %arg3: memref<3x8x128xf32, #tpu.memory_space<vmem>>, %arg4: memref<3x8x128xf32, #tpu.memory_space<vmem>>) attributes {dimension_semantics = [#tpu.dimension_semantics<parallel>], iteration_bounds = array<i64: 1>, scalar_prefetch = 0 : i64, scratch_operands = 0 : i64, tpu.core_type = #tpu.core_type<tc>, window_params = [{transform_indices = @transform_0, window_bounds = array<i64: 9>}, {transform_indices = @transform_1, window_bounds = array<i64: 3, 8, 128>}, {transform_indices = @transform_2, window_bounds = array<i64: 3, 8, 128>}, {transform_indices = @transform_3, window_bounds = array<i64: 3, 8, 128>}]} {
    %c0 = arith.constant 0 : index
    %c0_0 = arith.constant 0 : index
    %c0_1 = arith.constant 0 : index
    %0 = vector.load %arg2[%c0, %c0_0, %c0_1] : memref<3x8x128xf32, #tpu.memory_space<vmem>>, vector<1x8x128xf32>
    %1 = vector.shape_cast %0 : vector<1x8x128xf32> to vector<8x128xf32>
    %c1 = arith.constant 1 : index
    %c0_2 = arith.constant 0 : index
    %c0_3 = arith.constant 0 : index
    %2 = vector.load %arg2[%c1, %c0_2, %c0_3] : memref<3x8x128xf32, #tpu.memory_space<vmem>>, vector<1x8x128xf32>
    %3 = vector.shape_cast %2 : vector<1x8x128xf32> to vector<8x128xf32>
    %c2 = arith.constant 2 : index
    %c0_4 = arith.constant 0 : index
    %c0_5 = arith.constant 0 : index
    %4 = vector.load %arg2[%c2, %c0_4, %c0_5] : memref<3x8x128xf32, #tpu.memory_space<vmem>>, vector<1x8x128xf32>
    %5 = vector.shape_cast %4 : vector<1x8x128xf32> to vector<8x128xf32>
    %6 = arith.mulf %1, %1 : vector<8x128xf32>
    %7 = arith.mulf %3, %3 : vector<8x128xf32>
    %8 = arith.addf %6, %7 : vector<8x128xf32>
    %9 = arith.mulf %5, %5 : vector<8x128xf32>
    %10 = arith.addf %8, %9 : vector<8x128xf32>
    %11 = math.sqrt %10 : vector<8x128xf32>
    %c0_6 = arith.constant 0 : index
    %12 = memref.load %arg1[%c0_6] : memref<9xf32, #tpu.memory_space<smem>>
    %c3 = arith.constant 3 : index
    %13 = memref.load %arg1[%c3] : memref<9xf32, #tpu.memory_space<smem>>
    %c6 = arith.constant 6 : index
    %14 = memref.load %arg1[%c6] : memref<9xf32, #tpu.memory_space<smem>>
    %cst = arith.constant 0.000000e+00 : f32
    %15 = arith.subf %cst, %13 : f32
    %16 = vector.broadcast %15 : f32 to vector<8x128xf32>
    %17 = arith.mulf %16, %11 : vector<8x128xf32>
    %18 = math.exp %17 : vector<8x128xf32>
    %cst_7 = arith.constant 0.000000e+00 : f32
    %19 = arith.subf %cst_7, %14 : f32
    %20 = vector.broadcast %19 : f32 to vector<8x128xf32>
    %21 = arith.mulf %20, %11 : vector<8x128xf32>
    %22 = math.exp %21 : vector<8x128xf32>
    %cst_8 = arith.constant 1.000000e+00 : f32
    %23 = vector.broadcast %cst_8 : f32 to vector<8x128xf32>
    %24 = arith.subf %23, %22 : vector<8x128xf32>
    %25 = vector.broadcast %12 : f32 to vector<8x128xf32>
    %26 = arith.mulf %25, %24 : vector<8x128xf32>
    %c0_9 = arith.constant 0 : index
    %c0_10 = arith.constant 0 : index
    %c0_11 = arith.constant 0 : index
    %27 = vector.load %arg3[%c0_9, %c0_10, %c0_11] : memref<3x8x128xf32, #tpu.memory_space<vmem>>, vector<1x8x128xf32>
    %28 = vector.shape_cast %27 : vector<1x8x128xf32> to vector<8x128xf32>
    %29 = arith.mulf %28, %18 : vector<8x128xf32>
    %30 = arith.addf %29, %26 : vector<8x128xf32>
    %c0_12 = arith.constant 0 : index
    %c0_13 = arith.constant 0 : index
    %c0_14 = arith.constant 0 : index
    %31 = vector.load %arg4[%c0_12, %c0_13, %c0_14] : memref<3x8x128xf32, #tpu.memory_space<vmem>>, vector<1x8x128xf32>
    %32 = vector.shape_cast %31 : vector<1x8x128xf32> to vector<8x128xf32>
    %33 = vector.shape_cast %30 : vector<8x128xf32> to vector<1x8x128xf32>
    tpu.vector_store %arg4[%c0_12, %c0_13, %c0_14], %33 {strides = array<i32>} : memref<3x8x128xf32, #tpu.memory_space<vmem>>, vector<1x8x128xf32>,
    %c1_15 = arith.constant 1 : index
    %34 = memref.load %arg1[%c1_15] : memref<9xf32, #tpu.memory_space<smem>>
    %c4 = arith.constant 4 : index
    %35 = memref.load %arg1[%c4] : memref<9xf32, #tpu.memory_space<smem>>
    %c7 = arith.constant 7 : index
    %36 = memref.load %arg1[%c7] : memref<9xf32, #tpu.memory_space<smem>>
    %cst_16 = arith.constant 0.000000e+00 : f32
    %37 = arith.subf %cst_16, %35 : f32
    %38 = vector.broadcast %37 : f32 to vector<8x128xf32>
    %39 = arith.mulf %38, %11 : vector<8x128xf32>
    %40 = math.exp %39 : vector<8x128xf32>
    %cst_17 = arith.constant 0.000000e+00 : f32
    %41 = arith.subf %cst_17, %36 : f32
    %42 = vector.broadcast %41 : f32 to vector<8x128xf32>
    %43 = arith.mulf %42, %11 : vector<8x128xf32>
    %44 = math.exp %43 : vector<8x128xf32>
    %cst_18 = arith.constant 1.000000e+00 : f32
    %45 = vector.broadcast %cst_18 : f32 to vector<8x128xf32>
    %46 = arith.subf %45, %44 : vector<8x128xf32>
    %47 = vector.broadcast %34 : f32 to vector<8x128xf32>
    %48 = arith.mulf %47, %46 : vector<8x128xf32>
    %c1_19 = arith.constant 1 : index
    %c0_20 = arith.constant 0 : index
    %c0_21 = arith.constant 0 : index
    %49 = vector.load %arg3[%c1_19, %c0_20, %c0_21] : memref<3x8x128xf32, #tpu.memory_space<vmem>>, vector<1x8x128xf32>
    %50 = vector.shape_cast %49 : vector<1x8x128xf32> to vector<8x128xf32>
    %51 = arith.mulf %50, %40 : vector<8x128xf32>
    %52 = arith.addf %51, %48 : vector<8x128xf32>
    %c1_22 = arith.constant 1 : index
    %c0_23 = arith.constant 0 : index
    %c0_24 = arith.constant 0 : index
    %53 = vector.load %arg4[%c1_22, %c0_23, %c0_24] : memref<3x8x128xf32, #tpu.memory_space<vmem>>, vector<1x8x128xf32>
    %54 = vector.shape_cast %53 : vector<1x8x128xf32> to vector<8x128xf32>
    %55 = vector.shape_cast %52 : vector<8x128xf32> to vector<1x8x128xf32>
    tpu.vector_store %arg4[%c1_22, %c0_23, %c0_24], %55 {strides = array<i32>} : memref<3x8x128xf32, #tpu.memory_space<vmem>>, vector<1x8x128xf32>,
    %c2_25 = arith.constant 2 : index
    %56 = memref.load %arg1[%c2_25] : memref<9xf32, #tpu.memory_space<smem>>
    %c5 = arith.constant 5 : index
    %57 = memref.load %arg1[%c5] : memref<9xf32, #tpu.memory_space<smem>>
    %c8 = arith.constant 8 : index
    %58 = memref.load %arg1[%c8] : memref<9xf32, #tpu.memory_space<smem>>
    %cst_26 = arith.constant 0.000000e+00 : f32
    %59 = arith.subf %cst_26, %57 : f32
    %60 = vector.broadcast %59 : f32 to vector<8x128xf32>
    %61 = arith.mulf %60, %11 : vector<8x128xf32>
    %62 = math.exp %61 : vector<8x128xf32>
    %cst_27 = arith.constant 0.000000e+00 : f32
    %63 = arith.subf %cst_27, %58 : f32
    %64 = vector.broadcast %63 : f32 to vector<8x128xf32>
    %65 = arith.mulf %64, %11 : vector<8x128xf32>
    %66 = math.exp %65 : vector<8x128xf32>
    %cst_28 = arith.constant 1.000000e+00 : f32
    %67 = vector.broadcast %cst_28 : f32 to vector<8x128xf32>
    %68 = arith.subf %67, %66 : vector<8x128xf32>
    %69 = vector.broadcast %56 : f32 to vector<8x128xf32>
    %70 = arith.mulf %69, %68 : vector<8x128xf32>
    %c2_29 = arith.constant 2 : index
    %c0_30 = arith.constant 0 : index
    %c0_31 = arith.constant 0 : index
    %71 = vector.load %arg3[%c2_29, %c0_30, %c0_31] : memref<3x8x128xf32, #tpu.memory_space<vmem>>, vector<1x8x128xf32>
    %72 = vector.shape_cast %71 : vector<1x8x128xf32> to vector<8x128xf32>
    %73 = arith.mulf %72, %62 : vector<8x128xf32>
    %74 = arith.addf %73, %70 : vector<8x128xf32>
    %c2_32 = arith.constant 2 : index
    %c0_33 = arith.constant 0 : index
    %c0_34 = arith.constant 0 : index
    %75 = vector.load %arg4[%c2_32, %c0_33, %c0_34] : memref<3x8x128xf32, #tpu.memory_space<vmem>>, vector<1x8x128xf32>
    %76 = vector.shape_cast %75 : vector<1x8x128xf32> to vector<8x128xf32>
    %77 = vector.shape_cast %74 : vector<8x128xf32> to vector<1x8x128xf32>
    tpu.vector_store %arg4[%c2_32, %c0_33, %c0_34], %77 {strides = array<i32>} : memref<3x8x128xf32, #tpu.memory_space<vmem>>, vector<1x8x128xf32>,
    return
  }
  func.func @transform_0(%arg0: i32) -> i32 {
    %c0_i32 = arith.constant 0 : i32
    %c0_i32_0 = arith.constant 0 : i32
    return %c0_i32 : i32
  }
  func.func @transform_1(%arg0: i32) -> (i32, i32, i32) {
    %c0_i32 = arith.constant 0 : i32
    %c0_i32_0 = arith.constant 0 : i32
    %c0_i32_1 = arith.constant 0 : i32
    return %c0_i32, %arg0, %c0_i32_0 : i32, i32, i32
  }
  func.func @transform_2(%arg0: i32) -> (i32, i32, i32) {
    %c0_i32 = arith.constant 0 : i32
    %c0_i32_0 = arith.constant 0 : i32
    %c0_i32_1 = arith.constant 0 : i32
    return %c0_i32, %arg0, %c0_i32_0 : i32, i32, i32
  }
  func.func @transform_3(%arg0: i32) -> (i32, i32, i32) {
    %c0_i32 = arith.constant 0 : i32
    %c0_i32_0 = arith.constant 0 : i32
    %c0_i32_1 = arith.constant 0 : i32
    return %c0_i32, %arg0, %c0_i32_0 : i32, i32, i32
  }
}

</mosaic_0001>

<bundles_post_ra>
// kernel: tpu_custom_call.1
= control target key start
LH: loop header
LB: loop body
LE: loop exit
PB: predicated region body
PF: predicated region fallthrough
CT: control target
= control target key end

     0   :  { %8 = vsyncpa [#allocation5], 0  ;;  %s349_s0 = inlined_call_operand.hbm [shape: f32[9], index: 0, kind: input, shape index: {}]   ;;  %s350_s1 = inlined_call_operand.hbm [shape: f32[3,8,128], index: 1, kind: input, shape index: {}]   ;;  %s351_s2 = inlined_call_operand.hbm [shape: f32[3,8,128], index: 2, kind: input, shape index: {}]   ;;  %s352_s3 = inlined_call_operand.hbm [shape: f32[3,8,128], index: 3, kind: output, shape index: {}]  }
   0x1   :  { %9 = vsyncpa [#allocation3], 0 }
   0x2   :  { %10 = vsyncpa [#allocation8], 0 }
   0x3   :  { %11 = vsyncpa [#allocation4], 0  ;;  %s182_s14 = scalar_lea.hbm %s349_s0, 16 }
   0x4   :  { %p183_p0 = scmp.ne.s32.totalorder %s349_s0, %s182_s14  ;;  %p186_p1 = scmp.lt.u32.totalorder %s182_s14, %s349_s0 }
   0x6   :  { %p188_p2 = pnand %p186_p1, %p183_p0 }
   0x8   :  { %191 = shalt.err (!%p188_p2)
}
   0x9   :  { %s266_s19 = smov [#allocation2]   ;;  %s267_s22 = smov [#allocation6]  }
   0xa   :  { %19 = dma.hbm_to_smem %s349_s0, 16, %s266_s19, [#allocation5]  }
   0xb   :  { %s25_s23 = sshll.u32 %s267_s22, 4  ;;  %s192_s26 = scalar_lea.hbm %s350_s1, 384  ;;  %s26_s23 = int_to_ptr.vmem [resolvable:$true] %s25_s23 }
   0xc   :  { %p193_p3 = scmp.ne.s32.totalorder %s350_s1, %s192_s26  ;;  %p196_p4 = scmp.lt.u32.totalorder %s192_s26, %s350_s1 }
   0xe   :  { %p198_p5 = pnand %p196_p4, %p193_p3 }
  0x10   :  { %201 = shalt.err (!%p198_p5)
}
  0x11   :  { %s202_s4 = scalar_lea.vmem %s26_s23, 384  ;;  %p207_p7 = scmp.lt.s32.totalorder %s26_s23, %s26_s23 }
  0x12   :  { %p203_p6 = scmp.ne.s32.totalorder %s26_s23, %s202_s4  ;;  %p208_p8 = scmp.lt.s32.totalorder %s202_s4, %s202_s4 }
  0x14   :  { %p209_p9 = por %p208_p8, %p207_p7 }
  0x16   :  { %p210_p10 = pnand %p209_p9, %p203_p6 }
  0x18   :  { %213 = shalt.err (!%p210_p10)
}
  0x19   :  { %s268_s0 = smov 128   ;;  %s269_s5 = smov 8  }
  0x1a   :  { %31 = dma.hbm_to_vmem [thread:$0]  %s350_s1, 384, %s26_s23, [#allocation3], %s268_s0, %s268_s0, %s269_s5  }
  0x1b   :  { %s270_s8 = smov [#allocation7]   ;;  %s214_s12 = scalar_lea.hbm %s351_s2, 384 }
  0x1c   :  { %s37_s9 = sshll.u32 %s270_s8, 4  ;;  %p215_p11 = scmp.ne.s32.totalorder %s351_s2, %s214_s12  ;;  %s38_s9 = int_to_ptr.vmem [resolvable:$true] %s37_s9 }
  0x1d   :  { %p218_p12 = scmp.lt.u32.totalorder %s214_s12, %s351_s2 }
  0x1f   :  { %p220_p13 = pnand %p218_p12, %p215_p11 }
  0x21   :  { %223 = shalt.err (!%p220_p13)
}
  0x22   :  { %s224_s17 = scalar_lea.vmem %s38_s9, 384  ;;  %p229_p1 = scmp.lt.s32.totalorder %s38_s9, %s38_s9 }
  0x23   :  { %p225_p0 = scmp.ne.s32.totalorder %s38_s9, %s224_s17  ;;  %p230_p2 = scmp.lt.s32.totalorder %s224_s17, %s224_s17 }
  0x25   :  { %p231_p3 = por %p230_p2, %p229_p1 }
  0x27   :  { %p232_p4 = pnand %p231_p3, %p225_p0 }
  0x29   :  { %235 = shalt.err (!%p232_p4)
}
  0x2a   :  { %43 = dma.hbm_to_vmem [thread:$0]  %s351_s2, 384, %s38_s9, [#allocation8], %s268_s0, %s268_s0, %s269_s5  }
  0x2b   :  { %258 = dma.done.wait [#allocation5], 16  }
  0x2c   :  { %259 = vsyncadd [#allocation5], 4294967280 }
  0x2d   :  { %260 = dma.done.wait [#allocation3], 384  }
  0x2e   :  { %261 = vsyncadd [#allocation3], 4294966912 }
  0x2f   :  { %262 = dma.done.wait [#allocation8], 384  }
  0x30   :  { %263 = vsyncadd [#allocation8], 4294966912 }
  0x31   :  { %53 = sfence }
  0x32   :  { %v54_v0 = vld [vmem:[#allocation6] sm:$0xff]  ;;  %v56_v1 = vld [vmem:[#allocation6 + $0x8] sm:$0xff]  ;;  %v58_v2 = vld [vmem:[#allocation6 + $0x10] sm:$0xff]  ;;  %s154_s19 = sld [smem:[#allocation2 + $0x3]]  ;;  %s155_s20 = sld [smem:[#allocation2 + $0x6]] }
  0x33   :  { %v59_v3 = vmul.f32 %v54_v0, %v54_v0  ;;  %v60_v4 = vmul.f32 %v56_v1, %v56_v1  ;;  %v62_v5 = vmul.f32 %v58_v2, %v58_v2  ;;  %s157_s21 = sld [smem:[#allocation2 + $0x4]]  ;;  %s158_s22 = sld [smem:[#allocation2 + $0x7]]  ;;  %v87_v31 = vld [vmem:[#allocation7] sm:$0xff]  ;;  %v108_v35 = vld [vmem:[#allocation7 + $0x8] sm:$0xff]  ;;  %v130_v41 = vld [vmem:[#allocation7 + $0x10] sm:$0xff] }
  0x34   :  { %s160_s2 = sld [smem:[#allocation2 + $0x5]]  ;;  %s161_s23 = sld [smem:[#allocation2 + $0x8]] }
  0x35   :  { %v61_v6 = vadd.f32 %v60_v4, %v59_v3  ;;  %s71_s30 = sld [smem:[#allocation2]]  ;;  %s156_s4 = sld [smem:[#allocation2 + $0x1]] }
  0x36   :  { %s159_s6 = sld [smem:[#allocation2 + $0x2]]  ;;  %s271_s7 = smov [#allocation9]  }
  0x37   :  { %v63_v7 = vadd.f32 %v62_v5, %v61_v6  ;;  %s140_s8 = sshll.u32 %s271_s7, 4  ;;  %s141_s8 = int_to_ptr.vmem [resolvable:$true] %s140_s8 }
  0x38   :  { %s74_s24 = ssub.f32 0.0, %s154_s19  ;;  %s236_s9 = scalar_lea.vmem %s141_s8, 384 }
  0x39   :  { %168 = vrsqrt.f32 %v63_v7  ;;  %s79_s25 = ssub.f32 0.0, %s155_s20  ;;  %vm66_vm0 = vcmp.eq.f32.partialorder %v63_v7, inf  ;;  %v69_v9 = vand.u32 2147483648, %v63_v7  ;;  %vm68_vm1 = vcmp.eq.f32.partialorder %v63_v7, 0.0  ;;  %p237_p5 = scmp.ne.s32.totalorder %s141_s8, %s236_s9 }
  0x3a   :  { %s94_s26 = ssub.f32 0.0, %s157_s21  ;;  %v75_v11 = vstv %s74_s24  ;;  %p241_p6 = scmp.lt.s32.totalorder %s141_s8, %s141_s8 }
  0x3b   :  { %s99_s27 = ssub.f32 0.0, %s158_s22  ;;  %v80_v12 = vstv %s79_s25  ;;  %v85_v34 = vstv %s71_s30  ;;  %v105_v40 = vstv %s156_s4  ;;  %p242_p7 = scmp.lt.s32.totalorder %s236_s9, %s236_s9 }
  0x3c   :  { %s116_s28 = ssub.f32 0.0, %s160_s2  ;;  %v95_v13 = vstv %s94_s26  ;;  %v127_v47 = vstv %s159_s6 }
  0x3d   :  { %s121_s29 = ssub.f32 0.0, %s161_s23  ;;  %v100_v14 = vstv %s99_s27  ;;  %p243_p8 = por %p242_p7, %p241_p6 }
  0x3e   :  { %v117_v16 = vstv %s116_s28 }
  0x3f   :  { %v122_v17 = vstv %s121_s29  ;;  %p244_p9 = pnand %p243_p8, %p237_p5 }
  0x43   :  { %v169_v8 = vpop.eup %168 }
  0x44   :  { %v65_v10 = vmul.f32 %v169_v8, %v63_v7 }
  0x46   :  { %v67_v15 = vsel %vm66_vm0, %v63_v7, %v65_v10 }
  0x47   :  { %v70_v18 = vsel %vm68_vm1, %v69_v9, %v67_v15 }
  0x48   :  { %v76_v19 = vmul.f32 %v75_v11, %v70_v18  ;;  %v81_v20 = vmul.f32 %v80_v12, %v70_v18  ;;  %v96_v21 = vmul.f32 %v95_v13, %v70_v18  ;;  %v101_v22 = vmul.f32 %v100_v14, %v70_v18 }
  0x49   :  { %v118_v23 = vmul.f32 %v117_v16, %v70_v18  ;;  %v123_v24 = vmul.f32 %v122_v17, %v70_v18 }
  0x4a   :  { %v77_v25 = vmul.f32 1.442695, %v76_v19  ;;  %v82_v26 = vmul.f32 1.442695, %v81_v20  ;;  %v97_v27 = vmul.f32 1.442695, %v96_v21 }
  0x4b   :  { %v102_v28 = vmul.f32 1.442695, %v101_v22  ;;  %v119_v29 = vmul.f32 1.442695, %v118_v23  ;;  %v124_v30 = vmul.f32 1.442695, %v123_v24 }
  0x4c   :  { %170 = vpow2.f32 %v77_v25 }
  0x4d   :  { %172 = vpow2.f32 %v82_v26 }
  0x4e   :  { %174 = vpow2.f32 %v97_v27 }
  0x4f   :  { %176 = vpow2.f32 %v102_v28 }
  0x50   :  { %178 = vpow2.f32 %v119_v29 }
  0x51   :  { %180 = vpow2.f32 %v124_v30 }
  0x56   :  { %v171_v32 = vpop.eup %170 }
  0x57   :  { %v173_v33 = vpop.eup %172  ;;  %v88_v38 = vmul.f32 %v171_v32, %v87_v31 }
  0x58   :  { %v175_v36 = vpop.eup %174  ;;  %v84_v37 = vsub.f32 1.0, %v173_v33 }
  0x59   :  { %v177_v39 = vpop.eup %176  ;;  %v109_v45 = vmul.f32 %v175_v36, %v108_v35 }
  0x5a   :  { %v179_v42 = vpop.eup %178  ;;  %v86_v43 = vmul.f32 %v85_v34, %v84_v37  ;;  %v104_v44 = vsub.f32 1.0, %v177_v39 }
  0x5b   :  { %v181_v46 = vpop.eup %180  ;;  %v131_v51 = vmul.f32 %v179_v42, %v130_v41 }
  0x5c   :  { %v89_v48 = vadd.f32 %v88_v38, %v86_v43  ;;  %v106_v49 = vmul.f32 %v105_v40, %v104_v44  ;;  %v126_v50 = vsub.f32 1.0, %v181_v46 }
  0x5e   :  { %90 = vst [vmem:[#allocation9] sm:$0xff] %v89_v48  ;;  %v110_v52 = vadd.f32 %v109_v45, %v106_v49  ;;  %v128_v53 = vmul.f32 %v127_v47, %v126_v50 }
  0x60   :  { %112 = vst [vmem:[#allocation9 + $0x8] sm:$0xff] %v110_v52  ;;  %v132_v54 = vadd.f32 %v131_v51, %v128_v53 }
  0x62   :  { %134 = vst [vmem:[#allocation9 + $0x10] sm:$0xff] %v132_v54 }
  0x63   :  { %247 = shalt.err (!%p244_p9)
}
  0x64   :  { %s248_s12 = scalar_lea.hbm %s352_s3, 384 }
  0x65   :  { %p249_p10 = scmp.ne.s32.totalorder %s352_s3, %s248_s12  ;;  %p252_p11 = scmp.lt.u32.totalorder %s248_s12, %s352_s3 }
  0x67   :  { %p254_p12 = pnand %p252_p11, %p249_p10 }
  0x69   :  { %257 = shalt.err (!%p254_p12)
}
  0x6a   :  { %146 = dma.vmem_to_hbm [thread:$0]  %s141_s8, 384, %s352_s3, [#allocation4], %s268_s0, %s268_s0, %s269_s5  }
  0x6b   :  { %264 = dma.done.wait [#allocation4], 384  }
  0x6c   :  { %265 = vsyncadd [#allocation4], 4294966912 }
  0x6d   :  { %150 = vsyncpa [#allocation3], 1 }
  0x6e   :  { %151 = vsyncpa [#allocation8], 1 }
  0x6f   :  { %152 = vsyncpa [#allocation4], 1 }
  0x70   :  { %153 = vsyncpa [#allocation5], 1 }

</bundles_post_ra>
